<compile_context>
chip_gen: v7x
topology: tpu7x:2x2x1
jax: 0.10.0
libtpu: 0.0.40
codegen_flags: <defaults>
</compile_context>

<pallas_src>
import math

import jax
import jax.numpy as jnp
from jax.experimental import pallas as pl
from jax.experimental.pallas import tpu as pltpu


def _round_up(a, b):
    return ((a + b - 1) // b) * b


def _ffn_kernel(x_ref, w1_ref, w2_ref, p_ref, o_ref):
    # x tile: (tm, D); weights: (D, O) / (O, O); params: (4, O) = [b1; b2; gamma; beta]
    x = x_ref[...]
    w1 = w1_ref[...]
    w2 = w2_ref[...]
    b1 = p_ref[0:1, :]
    b2 = p_ref[1:2, :]
    gamma = p_ref[2:3, :]
    beta = p_ref[3:4, :]

    # Linear 1: [tm, D] @ [D, O] + [1, O]
    h = jnp.dot(x, w1, preferred_element_type=jnp.float32) + b1

    # Exact GELU (PyTorch nn.GELU default, erf-based) — kept exact for numerics parity.
    # TODO(synk): on v7x a lane-dense (tm//16, 128) relayout of `h` for this elementwise
    # chain (or tanh-approx GELU on the EUP) would cut the 8/128 lane-sparse VALU work;
    # skipped here pending lowering / numerics sign-off.
    h = 0.5 * h * (1.0 + jax.lax.erf(h * jnp.float32(1.0 / math.sqrt(2.0))))

    # Linear 2: [tm, O] @ [O, O] + [1, O]
    y = jnp.dot(h, w2, preferred_element_type=jnp.float32) + b2

    # LayerNorm over the feature axis, eps=1e-5, biased variance.
    mean = jnp.mean(y, axis=-1, keepdims=True)
    diff = y - mean
    var = jnp.mean(diff * diff, axis=-1, keepdims=True)
    out = diff * jax.lax.rsqrt(var + jnp.float32(1e-5)) * gamma + beta

    o_ref[...] = out.astype(o_ref.dtype)


def bottleneck_ffn(x2d, w1, w2, params, *, tm=4096):
    """x2d: [M, dim]; w1: [dim, out]; w2: [out, out]; params: [4, out]
    (rows: b1, b2, ln_gamma, ln_beta).  Returns [M, out]."""
    M, D = x2d.shape
    O = w1.shape[1]

    # ---- row-tile / grid selection --------------------------------------
    m_pad8 = _round_up(M, 8)
    tm_max = max(8, _round_up(min(tm, m_pad8), 8))
    # v7x has 2 TensorCores: keep >= 2 grid steps whenever the problem allows
    # so the "parallel" axis actually splits across both cores.
    if m_pad8 >= 16:
        tm_max = min(tm_max, _round_up(pl.cdiv(m_pad8, 2), 8))
    grid = pl.cdiv(m_pad8, tm_max)
    # Prefer an even step count (clean 2-way megacore split); cheap because the
    # tile is rebalanced to the grid below.
    if grid > 1 and grid % 2 == 1:
        grid += 1
    # Rebalance the tile to the grid: padding is now bounded by ~8 rows per tile
    # instead of up to tm-1 rows (avoids up to 2x wasted HBM traffic on x).
    tm = _round_up(pl.cdiv(m_pad8, grid), 8)
    m_total = grid * tm
    if m_total != M:
        x2d = jnp.pad(x2d, ((0, m_total - M), (0, 0)))

    # ---- advisory cost + explicit VMEM budget ----------------------------
    flops = 2 * m_total * D * O + 2 * m_total * O * O + 12 * m_total * O
    transcendentals = m_total * O + m_total  # erf + rsqrt per row
    bytes_accessed = 4 * (m_total * D + 2 * m_total * O + D * O + O * O + 4 * O)

    x_buf = 2 * tm * D * 4            # double-buffered x tile
    o_buf = 2 * tm * O * 4            # double-buffered out tile
    w_buf = 2 * (D * O + O * O + 4 * O) * 4
    tmp_buf = 4 * tm * O * 4          # h / y / LN temporaries (f32)
    vmem_limit = int(min(max(2 * (x_buf + o_buf + w_buf + tmp_buf), 32 << 20), 100 << 20))

    out = pl.pallas_call(
        _ffn_kernel,
        out_shape=jax.ShapeDtypeStruct((m_total, O), x2d.dtype),
        grid_spec=pltpu.PrefetchScalarGridSpec(
            num_scalar_prefetch=0,
            grid=(grid,),
            in_specs=[
                pl.BlockSpec((tm, D), lambda i: (i, 0)),   # x row-tile
                pl.BlockSpec((D, O), lambda i: (0, 0)),    # W1 (full, resident)
                pl.BlockSpec((O, O), lambda i: (0, 0)),    # W2 (full, resident)
                pl.BlockSpec((4, O), lambda i: (0, 0)),    # [b1; b2; gamma; beta]
            ],
            out_specs=pl.BlockSpec((tm, O), lambda i: (i, 0)),
        ),
        compiler_params=pltpu.CompilerParams(
            dimension_semantics=("parallel",),
            vmem_limit_bytes=vmem_limit,
        ),
        cost_estimate=pl.CostEstimate(
            flops=int(flops),
            transcendentals=int(transcendentals),
            bytes_accessed=int(bytes_accessed),
        ),
    )(x2d, w1, w2, params)

    return out[:M]


def _xavier_uniform(key, fan_in, fan_out, dtype=jnp.float32):
    # matches torch.nn.init.xavier_uniform_(gain=1); stored as [in, out]
    bound = math.sqrt(6.0 / (fan_in + fan_out))
    return jax.random.uniform(key, (fan_in, fan_out), dtype, -bound, bound)


def _linear_bias(key, fan_in, fan_out, dtype=jnp.float32):
    # PyTorch nn.Linear default bias init: U(-1/sqrt(fan_in), 1/sqrt(fan_in))
    bound = 1.0 / math.sqrt(fan_in)
    return jax.random.uniform(key, (1, fan_out), dtype, -bound, bound)


def _reference(x2d, w1, b1, w2, b2, gamma, beta):
    h = x2d @ w1 + b1
    h = 0.5 * h * (1.0 + jax.lax.erf(h / jnp.sqrt(2.0)))
    y = h @ w2 + b2
    mu = y.mean(-1, keepdims=True)
    var = ((y - mu) ** 2).mean(-1, keepdims=True)
    return ((y - mu) * jax.lax.rsqrt(var + 1e-5)) * gamma + beta


if __name__ == "__main__":
    dim, out_dim = 256, 8
    batch, seq = 2, 8

    key = jax.random.PRNGKey(0)
    kx, kw1, kb1, kw2, kb2 = jax.random.split(key, 5)

    # Input: (batch, seq, dim) — Linear/LayerNorm act on the last axis.
    x = jax.random.normal(kx, (batch, seq, dim), jnp.float32)

    w1 = _xavier_uniform(kw1, dim, out_dim)        # Linear(dim, out_dim).weight.T
    b1 = _linear_bias(kb1, dim, out_dim)
    w2 = _xavier_uniform(kw2, out_dim, out_dim)    # Linear(out_dim, out_dim).weight.T
    b2 = _linear_bias(kb2, out_dim, out_dim)
    gamma = jnp.ones((1, out_dim), jnp.float32)    # LayerNorm.weight
    beta = jnp.zeros((1, out_dim), jnp.float32)    # LayerNorm.bias

    params = jnp.concatenate([b1, b2, gamma, beta], axis=0)  # (4, out_dim)

    x2d = x.reshape(batch * seq, dim)
    out2d = bottleneck_ffn(x2d, w1, w2, params)
    out = out2d.reshape(batch, seq, out_dim)
    jax.block_until_ready(out)

    ref = _reference(x2d, w1, b1, w2, b2, gamma, beta)
    assert jnp.allclose(out2d, ref, atol=1e-5, rtol=1e-5), "mismatch vs reference"

    # Also exercise the padded / rebalanced multi-tile path (M not a tile multiple).
    xb = jax.random.normal(kx, (300, dim), jnp.float32)
    ob = bottleneck_ffn(xb, w1, w2, params, tm=128)
    jax.block_until_ready(ob)
    refb = _reference(xb, w1, b1, w2, b2, gamma, beta)
    assert jnp.allclose(ob, refb, atol=1e-5, rtol=1e-5), "mismatch vs reference (padded path)"

    print("KERNEL_OK")
</pallas_src>

<mosaic_0001>
module attributes {stable_mosaic.version = 11 : i64} {
  func.func @_ffn_kernel(%arg0: i32, %arg1: memref<8x256xf32, #tpu.memory_space<vmem>>, %arg2: memref<256x8xf32, #tpu.memory_space<vmem>>, %arg3: memref<8x8xf32, #tpu.memory_space<vmem>>, %arg4: memref<4x8xf32, #tpu.memory_space<vmem>>, %arg5: memref<8x8xf32, #tpu.memory_space<vmem>>) attributes {dimension_semantics = [#tpu.dimension_semantics<parallel>], iteration_bounds = array<i64: 2>, scalar_prefetch = 0 : i64, scratch_operands = 0 : i64, tpu.core_type = #tpu.core_type<tc>, window_params = [{transform_indices = @transform_0, window_bounds = array<i64: 8, 256>}, {pipeline_mode = #tpu.pipeline_mode<synchronous>, transform_indices = @transform_1, window_bounds = array<i64: 256, 8>}, {pipeline_mode = #tpu.pipeline_mode<synchronous>, transform_indices = @transform_2, window_bounds = array<i64: 8, 8>}, {pipeline_mode = #tpu.pipeline_mode<synchronous>, transform_indices = @transform_3, window_bounds = array<i64: 4, 8>}, {transform_indices = @transform_4, window_bounds = array<i64: 8, 8>}]} {
    %c0 = arith.constant 0 : index
    %c0_0 = arith.constant 0 : index
    %0 = vector.load %arg1[%c0, %c0_0] : memref<8x256xf32, #tpu.memory_space<vmem>>, vector<8x256xf32>
    %c0_1 = arith.constant 0 : index
    %c0_2 = arith.constant 0 : index
    %1 = vector.load %arg2[%c0_1, %c0_2] : memref<256x8xf32, #tpu.memory_space<vmem>>, vector<256x8xf32>
    %c0_3 = arith.constant 0 : index
    %c0_4 = arith.constant 0 : index
    %2 = vector.load %arg3[%c0_3, %c0_4] : memref<8x8xf32, #tpu.memory_space<vmem>>, vector<8x8xf32>
    %c0_5 = arith.constant 0 : index
    %c0_6 = arith.constant 0 : index
    %3 = vector.load %arg4[%c0_5, %c0_6] : memref<4x8xf32, #tpu.memory_space<vmem>>, vector<1x8xf32>
    %c1 = arith.constant 1 : index
    %c0_7 = arith.constant 0 : index
    %4 = vector.load %arg4[%c1, %c0_7] : memref<4x8xf32, #tpu.memory_space<vmem>>, vector<1x8xf32>
    %c2 = arith.constant 2 : index
    %c0_8 = arith.constant 0 : index
    %5 = vector.load %arg4[%c2, %c0_8] : memref<4x8xf32, #tpu.memory_space<vmem>>, vector<1x8xf32>
    %c3 = arith.constant 3 : index
    %c0_9 = arith.constant 0 : index
    %6 = vector.load %arg4[%c3, %c0_9] : memref<4x8xf32, #tpu.memory_space<vmem>>, vector<1x8xf32>
    %cst = arith.constant dense<0.000000e+00> : vector<8x8xf32>
    %7 = tpu.matmul %0, %1, %cst {dimension_numbers = #tpu.dot_dimension_numbers<[1], [0], [0], [1], [0, 0, 1, 1], [], []>} : vector<8x256xf32>, vector<256x8xf32>, vector<8x8xf32> -> vector<8x8xf32>
    %8 = vector.broadcast %3 : vector<1x8xf32> to vector<8x8xf32>
    %9 = arith.addf %7, %8 : vector<8x8xf32>
    %cst_10 = arith.constant 5.000000e-01 : f32
    %10 = vector.broadcast %cst_10 : f32 to vector<8x8xf32>
    %11 = arith.mulf %10, %9 : vector<8x8xf32>
    %cst_11 = arith.constant 0.707106769 : f32
    %12 = vector.broadcast %cst_11 : f32 to vector<8x8xf32>
    %13 = arith.mulf %9, %12 : vector<8x8xf32>
    %14 = math.erf %13 : vector<8x8xf32>
    %cst_12 = arith.constant 1.000000e+00 : f32
    %15 = vector.broadcast %cst_12 : f32 to vector<8x8xf32>
    %16 = arith.addf %15, %14 : vector<8x8xf32>
    %17 = arith.mulf %11, %16 : vector<8x8xf32>
    %cst_13 = arith.constant dense<0.000000e+00> : vector<8x8xf32>
    %18 = tpu.matmul %17, %2, %cst_13 {dimension_numbers = #tpu.dot_dimension_numbers<[1], [0], [0], [1], [0, 0, 1, 1], [], []>} : vector<8x8xf32>, vector<8x8xf32>, vector<8x8xf32> -> vector<8x8xf32>
    %19 = vector.broadcast %4 : vector<1x8xf32> to vector<8x8xf32>
    %20 = arith.addf %18, %19 : vector<8x8xf32>
    %cst_14 = arith.constant dense<0.000000e+00> : vector<8xf32>
    %21 = vector.multi_reduction <add>, %20, %cst_14 [1] : vector<8x8xf32> to vector<8xf32>
    %22 = vector.shape_cast %21 : vector<8xf32> to vector<8x1xf32>
    %cst_15 = arith.constant 8.000000e+00 : f32
    %23 = vector.broadcast %cst_15 : f32 to vector<8x1xf32>
    %24 = arith.divf %22, %23 : vector<8x1xf32>
    %25 = vector.broadcast %24 : vector<8x1xf32> to vector<8x8xf32>
    %26 = arith.subf %20, %25 : vector<8x8xf32>
    %27 = arith.mulf %26, %26 : vector<8x8xf32>
    %cst_16 = arith.constant dense<0.000000e+00> : vector<8xf32>
    %28 = vector.multi_reduction <add>, %27, %cst_16 [1] : vector<8x8xf32> to vector<8xf32>
    %29 = vector.shape_cast %28 : vector<8xf32> to vector<8x1xf32>
    %cst_17 = arith.constant 8.000000e+00 : f32
    %30 = vector.broadcast %cst_17 : f32 to vector<8x1xf32>
    %31 = arith.divf %29, %30 : vector<8x1xf32>
    %cst_18 = arith.constant 9.99999974E-6 : f32
    %32 = vector.broadcast %cst_18 : f32 to vector<8x1xf32>
    %33 = arith.addf %31, %32 : vector<8x1xf32>
    %34 = math.rsqrt %33 : vector<8x1xf32>
    %35 = vector.broadcast %34 : vector<8x1xf32> to vector<8x8xf32>
    %36 = arith.mulf %26, %35 : vector<8x8xf32>
    %37 = vector.broadcast %5 : vector<1x8xf32> to vector<8x8xf32>
    %38 = arith.mulf %36, %37 : vector<8x8xf32>
    %39 = vector.broadcast %6 : vector<1x8xf32> to vector<8x8xf32>
    %40 = arith.addf %38, %39 : vector<8x8xf32>
    %c0_19 = arith.constant 0 : index
    %c0_20 = arith.constant 0 : index
    %41 = vector.load %arg5[%c0_19, %c0_20] : memref<8x8xf32, #tpu.memory_space<vmem>>, vector<8x8xf32>
    tpu.vector_store %arg5[%c0_19, %c0_20], %40 {strides = array<i32>} : memref<8x8xf32, #tpu.memory_space<vmem>>, vector<8x8xf32>,
    return
  }
  func.func @transform_0(%arg0: i32) -> (i32, i32) {
    %c0_i32 = arith.constant 0 : i32
    %c0_i32_0 = arith.constant 0 : i32
    return %arg0, %c0_i32 : i32, i32
  }
  func.func @transform_1(%arg0: i32) -> (i32, i32) {
    %c0_i32 = arith.constant 0 : i32
    %c0_i32_0 = arith.constant 0 : i32
    %c0_i32_1 = arith.constant 0 : i32
    return %c0_i32, %c0_i32_0 : i32, i32
  }
  func.func @transform_2(%arg0: i32) -> (i32, i32) {
    %c0_i32 = arith.constant 0 : i32
    %c0_i32_0 = arith.constant 0 : i32
    %c0_i32_1 = arith.constant 0 : i32
    return %c0_i32, %c0_i32_0 : i32, i32
  }
  func.func @transform_3(%arg0: i32) -> (i32, i32) {
    %c0_i32 = arith.constant 0 : i32
    %c0_i32_0 = arith.constant 0 : i32
    %c0_i32_1 = arith.constant 0 : i32
    return %c0_i32, %c0_i32_0 : i32, i32
  }
  func.func @transform_4(%arg0: i32) -> (i32, i32) {
    %c0_i32 = arith.constant 0 : i32
    %c0_i32_0 = arith.constant 0 : i32
    return %arg0, %c0_i32 : i32, i32
  }
}

</mosaic_0001>

<bundles_post_ra>
// kernel: tpu_custom_call.1
= control target key start
LH: loop header
LB: loop body
LE: loop exit
PB: predicated region body
PF: predicated region fallthrough
CT: control target
= control target key end

     0   :  { %s609_s15 = smov 0   ;;  %s749_s0 = inlined_call_operand.vmem [shape: f32[16,256], index: 0, kind: input, shape index: {}]   ;;  %s750_s1 = inlined_call_operand.vmem [shape: f32[256,8], index: 1, kind: input, shape index: {}]   ;;  %s751_s2 = inlined_call_operand.vmem [shape: f32[8,8], index: 2, kind: input, shape index: {}]   ;;  %s752_s3 = inlined_call_operand.vmem [shape: f32[4,8], index: 3, kind: input, shape index: {}]   ;;  %s753_s4 = inlined_call_operand.vmem [shape: f32[16,8], index: 4, kind: output, shape index: {}]  }
   0x1 LB: > { %s470_s16 = sadd.s32 4294967295, %s580_s15   ;;  %p474_p0 = scmp.ge.s32.totalorder %s580_s15, 1  ;;  %s580_s15 = sphi %s609_s15, %s14_s15  }
   0x2   : > { %p162_p1 = scmp.lt.s32.totalorder %s580_s15, 3 }
   0x4   : > { %p163_p2 = pnand %p474_p0, %p162_p1 }
   0x5   : > { %v214_v0 = vld [vmem:[%s750_s1 + $0x80] sm:$0xff] (!%p163_p2)  ;;  %v215_v1 = vld [vmem:[%s750_s1 + $0x88] sm:$0xff] (!%p163_p2)  ;;  %p187_p3 = scmp.lt.s32.totalorder (!%p163_p2), %s470_s16, 1  ;;  %v216_v5 = vld [vmem:[%s750_s1 + $0x90] sm:$0xff] (!%p163_p2)  ;;  %v582_v50 = vmov (!%p163_p2), 0.0   ;;  %vm583_vm0 = vmmov (!%p163_p2), 0  }
   0x6   : > { %166 = sbr.rel (%p163_p2) target bundleno = 802 (0x322), region = 36  ;;  %v198_v2 = vld [vmem:[%s750_s1] sm:$0xff] (!%p163_p2)  ;;  %v528_v3 = vpack.c.bf16 (!%p163_p2), %v215_v1, %v214_v0  ;;  %v199_v4 = vld [vmem:[%s750_s1 + $0x8] sm:$0xff] (!%p163_p2)  ;;  %v217_v6 = vld [vmem:[%s750_s1 + $0x98] sm:$0xff] (!%p163_p2)  ;;  %523 = vmatprep.subr.mxu1 (!%p163_p2), %v582_v50  ;;  %525 = vmatprep.mubr.msk.f32.mxu1 (!%p163_p2), %vm583_vm0, %v582_v50  ;;  %vm318_vm1 = vcmask (!%p163_p2), 64512  }
   0x7   : > { %v530_v7 = vpack.c.bf16 (!%p163_p2), %v199_v4, %v198_v2  ;;  %v532_v8 = vpack.c.bf16 (!%p163_p2), %v217_v6, %v216_v5  ;;  %v200_v9 = vld [vmem:[%s750_s1 + $0x10] sm:$0xff] (!%p163_p2)  ;;  %v201_v10 = vld [vmem:[%s750_s1 + $0x18] sm:$0xff] (!%p163_p2)  ;;  %v218_v11 = vld [vmem:[%s750_s1 + $0xa0] sm:$0xff] (!%p163_p2) }
   0x8   : > { %529 = vmatprep.subr.bf16.mxu0 (!%p163_p2), %v528_v3  ;;  %v219_v12 = vld [vmem:[%s750_s1 + $0xa8] sm:$0xff] (!%p163_p2)  ;;  %v534_v13 = vpack.c.bf16 (!%p163_p2), %v201_v10, %v200_v9  ;;  %v202_v15 = vld [vmem:[%s750_s1 + $0x20] sm:$0xff] (!%p163_p2)  ;;  %v220_v17 = vld [vmem:[%s750_s1 + $0xb0] sm:$0xff] (!%p163_p2) }
   0x9   : > { %531 = vmatpush3.bf16.msra.mxu0 (!%p163_p2), %v530_v7  ;;  %v536_v14 = vpack.c.bf16 (!%p163_p2), %v219_v12, %v218_v11  ;;  %v203_v16 = vld [vmem:[%s750_s1 + $0x28] sm:$0xff] (!%p163_p2)  ;;  %v221_v18 = vld [vmem:[%s750_s1 + $0xb8] sm:$0xff] (!%p163_p2)  ;;  %v204_v21 = vld [vmem:[%s750_s1 + $0x30] sm:$0xff] (!%p163_p2) }
   0xa   : > { %533 = vmatprep.subr.bf16.mxu0 (!%p163_p2), %v532_v8  ;;  %v538_v19 = vpack.c.bf16 (!%p163_p2), %v203_v16, %v202_v15  ;;  %v540_v20 = vpack.c.bf16 (!%p163_p2), %v221_v18, %v220_v17  ;;  %v205_v22 = vld [vmem:[%s750_s1 + $0x38] sm:$0xff] (!%p163_p2)  ;;  %v222_v23 = vld [vmem:[%s750_s1 + $0xc0] sm:$0xff] (!%p163_p2)  ;;  %v223_v24 = vld [vmem:[%s750_s1 + $0xc8] sm:$0xff] (!%p163_p2) }
   0xb   : > { %v542_v26 = vpack.c.bf16 (!%p163_p2), %v205_v22, %v204_v21  ;;  %v544_v27 = vpack.c.bf16 (!%p163_p2), %v223_v24, %v222_v23  ;;  %v206_v28 = vld [vmem:[%s750_s1 + $0x40] sm:$0xff] (!%p163_p2)  ;;  %v207_v29 = vld [vmem:[%s750_s1 + $0x48] sm:$0xff] (!%p163_p2)  ;;  %v224_v30 = vld [vmem:[%s750_s1 + $0xd0] sm:$0xff] (!%p163_p2) }
   0xc   : > { %v225_v31 = vld [vmem:[%s750_s1 + $0xd8] sm:$0xff] (!%p163_p2)  ;;  %v546_v32 = vpack.c.bf16 (!%p163_p2), %v207_v29, %v206_v28  ;;  %v208_v34 = vld [vmem:[%s750_s1 + $0x50] sm:$0xff] (!%p163_p2)  ;;  %v226_v36 = vld [vmem:[%s750_s1 + $0xe0] sm:$0xff] (!%p163_p2) }
   0xd   : > { %s755_s16 = smov (!%p187_p3, %s470_s16), 1  ;;  %535 = vmatpush3.bf16.msra.mxu0 %v534_v13  ;;  %v548_v33 = vpack.c.bf16 %v225_v31, %v224_v30  ;;  %v209_v35 = vld [vmem:[%s750_s1 + $0x58] sm:$0xff]  ;;  %v227_v37 = vld [vmem:[%s750_s1 + $0xe8] sm:$0xff]  ;;  %v210_v40 = vld [vmem:[%s750_s1 + $0x60] sm:$0xff] }
   0xe   : > { %s485_s11 = sshll.u32 %s755_s16, 4  ;;  %537 = vmatprep.subr.bf16.mxu0 %v536_v14  ;;  %v550_v38 = vpack.c.bf16 %v209_v35, %v208_v34  ;;  %v552_v39 = vpack.c.bf16 %v227_v37, %v226_v36  ;;  %v211_v41 = vld [vmem:[%s750_s1 + $0x68] sm:$0xff]  ;;  %v228_v42 = vld [vmem:[%s750_s1 + $0xf0] sm:$0xff]  ;;  %v229_v43 = vld [vmem:[%s750_s1 + $0xf8] sm:$0xff]  ;;  %s477_s21 = sshll.u32 %s755_s16, 3 }
   0xf   : > { %s665_s24 = scalar_lea.vmem %s749_s0, %s485_s11  ;;  %v554_v44 = vpack.c.bf16 %v211_v41, %v210_v40  ;;  %v556_v45 = vpack.c.bf16 %v229_v43, %v228_v42  ;;  %v212_v46 = vld [vmem:[%s750_s1 + $0x70] sm:$0xff]  ;;  %v213_v47 = vld [vmem:[%s750_s1 + $0x78] sm:$0xff]  ;;  %v230_v51 = vld [vmem:[%s751_s2] sm:$0xff]  ;;  %s195_s27 = scalar_lea.vmem %s753_s4, %s477_s21 }
  0x10   : > { %v197_v25 = vld [vmem:[%s665_s24 + $0x8] sm:$0xff]  ;;  %v558_v48 = vpack.c.bf16 %v213_v47, %v212_v46  ;;  %v196_v49 = vld [vmem:[%s665_s24] sm:$0xff]  ;;  %524 = vmatpush3.msra.mxu1 %v230_v51 }
  0x11   : > { %303 = vmatprep.mubr.f32.mxu0 %v197_v25  ;;  %539 = vmatpush3.bf16.msra.mxu0 %v538_v19  ;;  %v478_v53 = vld [vmem:[%s752_s3] ss:$0 sm:$0xff]  ;;  %v479_v62 = vld [vmem:[%s752_s3 + $0x1] ss:$0 sm:$0xff]  ;;  %v481_v12 = vld [vmem:[%s752_s3 + $0x2] ss:$0 sm:$0xff] }
  0x12   : > { %541 = vmatprep.subr.bf16.mxu0 %v540_v20  ;;  %v482_v14 = vld [vmem:[%s752_s3 + $0x3] ss:$0 sm:$0xff] }
  0x15   : > { %543 = vmatpush3.bf16.msra.mxu0 %v542_v26 }
  0x16   : > { %545 = vmatprep.subr.bf16.mxu0 %v544_v27 }
  0x19   : > { %547 = vmatpush3.bf16.msra.mxu0 %v546_v32 }
  0x1a   : > { %549 = vmatprep.subr.bf16.mxu0 %v548_v33 }
  0x1d   : > { %551 = vmatpush3.bf16.msra.mxu0 %v550_v38 }
  0x1e   : > { %553 = vmatprep.subr.bf16.mxu0 %v552_v39 }
  0x21   : > { %555 = vmatpush3.bf16.msra.mxu0 %v554_v44 }
  0x22   : > { %557 = vmatprep.subr.bf16.mxu0 %v556_v45 }
  0x25   : > { %559 = vmatpush3.bf16.msra.mxu0 %v558_v48 }
  0x28   : > { %304 = vmatmul.mubr.f32.vlgmr.msra.gmra.mrb[0].mxu0 %v196_v49 }
  0xfb   : > { %v518_v52 = vpop.f32.mrb[0].mxu0 }
  0xfc   : > { %v519_v54 = vpop.f32.mrb[1].mxu0 }
  0xfd   : > { %v520_v55 = vadd.f32 %v519_v54, %v518_v52 }
  0xff   : > { %v306_v56 = vadd.f32 %v520_v55, %v478_v53 }
 0x101   : > { %v310_v57 = vmul.f32 0.70710677, %v306_v56  ;;  %v309_v59 = vmul.f32 0.5, %v306_v56 }
 0x103   : > { %570 = verf.f32 %v310_v57 }
 0x10d   : > { %v571_v58 = vpop.eup %570 }
 0x10e   : > { %v312_v60 = vadd.f32 1.0, %v571_v58 }
 0x110   : > { %v313_v61 = vmul.f32 %v312_v60, %v309_v59 }
 0x112   : > { %526 = vmatmul.mubr.msk.f32.vlgmr.msra.gmra.mrb[0].mxu1 %vm318_vm1, %v313_v61 }
 0x1e5   : > { %v388_v63 = vpop.f32.mrb[0].mxu1 }
 0x1e6   : > { %v389_v0 = vadd.f32 %v479_v62, %v388_v63  ;;  %v527_v1 = vpop.f32.mrb[1].mxu1 }
 0x1e8   : > { %v392_v2 = vsel %vm318_vm1, %v389_v0, 0.0 }
 0x1e9   : > { %393 = vadd.xlane.f32.xlu0 %v392_v2 }
 0x276   : > { %v394_v3 = vpop.xlane.xlu0 %393 }
 0x277   : > { %v396_v4 = vmul.f32 0.125, %v394_v3 }
 0x279   : > { %v397_v5 = vsub.f32 %v389_v0, %v396_v4 }
 0x27b   : > { %v398_v6 = vmul.f32 %v397_v5, %v397_v5 }
 0x27d   : > { %v399_v7 = vsel %vm318_vm1, %v398_v6, 0.0 }
 0x27e   : > { %400 = vadd.xlane.f32.xlu0 %v399_v7 }
 0x30b   : > { %v401_v8 = vpop.xlane.xlu0 %400 }
 0x30c   : > { %v402_v9 = vmul.f32 0.125, %v401_v8 }
 0x30e   : > { %v403_v10 = vadd.f32 1e-05, %v402_v9 }
 0x310   : > { %572 = vrsqrt.f32 %v403_v10 }
 0x31a   : > { %v573_v11 = vpop.eup %572 }
 0x31b   : > { %v405_v13 = vmul.f32 %v573_v11, %v397_v5 }
 0x31d   : > { %v410_v15 = vmul.f32 %v481_v12, %v405_v13 }
 0x31f   : > { %v415_v16 = vadd.f32 %v482_v14, %v410_v15 }
 0x321   : > { %416 = vst.msk [vmem:[%s195_s27] sm:$0xff] %vm318_vm1, %v415_v16 }
 0x322 PF: > { %s14_s15 = sadd.s32 1, %s580_s15  }
 0x323   : > { %p11_p4 = scmp.ge.s32.totalorder %s14_s15, 4  }
 0x325   :  { %13 = sbr.rel (!%p11_p4) target bundleno = 1 (0x1), region = 66 }

</bundles_post_ra>
